<compile_context>
chip_gen: v6e
topology: v6e:2x2x1
jax: 0.10.0
libtpu: 0.0.40
codegen_flags: <defaults>
</compile_context>

<pallas_src>
import functools

import jax
import jax.numpy as jnp
from jax.experimental import pallas as pl
from jax.experimental.pallas import tpu as pltpu


def _round_up(v: int, m: int) -> int:
    return ((v + m - 1) // m) * m


def _nn2_kernel(x_ref, w1_ref, b1_ref, w2_ref, b2_ref, w3_ref, b3_ref,
                o_ref, *, min_variance):
    # Layer 1: contract the feature axis of x directly (rhs-transposed matmul,
    # same dimension numbers as q @ k.T) -> lane-dense h1T = [n_hidden, tb].
    # MXU operands matched to x's dtype; accumulation f32.
    x = x_ref[...]                                           # [tb, n_in]
    h1 = jax.lax.dot_general(
        w1_ref[...].astype(x.dtype), x,
        (((1,), (1,)), ((), ())),
        preferred_element_type=jnp.float32) + b1_ref[...]    # [n_hidden, tb]
    h1 = jnp.maximum(h1, 0.0)

    # Layer 2: plain [32,32] @ [32,tb]; only the MXU operand is cast to the
    # weight dtype (bf16 when enabled), bias-add/ReLU stays f32 on the VPU.
    h2 = jnp.dot(w2_ref[...], h1.astype(w2_ref.dtype),
                 preferred_element_type=jnp.float32) + b2_ref[...]
    h2 = jnp.maximum(h2, 0.0)                                # [n_hidden, tb]

    # Dropout: eval-mode identity. Output head -> lane-dense [2, tb].
    out = jnp.dot(w3_ref[...], h2.astype(w3_ref.dtype),
                  preferred_element_type=jnp.float32) + b3_ref[...]
    s = jax.nn.sigmoid(out)                                  # [2, tb]

    # row 0 = mean = sigmoid, row 1 = variance = sigmoid*0.1 + min_variance.
    # Single full-tile store of the lane-dense (2, tb) block.
    row = jax.lax.broadcasted_iota(jnp.int32, s.shape, dimension=0)
    o_ref[...] = jnp.where(row == 1, s * 0.1 + min_variance, s).astype(o_ref.dtype)


def prepare_nn2_params(w1, b1, w2, b2, w3, b3, dtype=jnp.float32):
    """One-time preprocessing (do NOT call per forward pass).

    Weights stay in PyTorch [out, in] form (exactly what the transposed,
    lane-dense kernel layout consumes — no transposes anywhere). Biases become
    [out, 1] columns kept in f32 so every post-matmul VPU add stays f32 on all
    generations (v5e VPU has no bf16). `dtype` controls the MXU operand dtype
    for the weights (f32 or bf16).
    """
    return (jnp.asarray(w1).astype(dtype),
            jnp.asarray(b1).reshape(-1, 1).astype(jnp.float32),
            jnp.asarray(w2).astype(dtype),
            jnp.asarray(b2).reshape(-1, 1).astype(jnp.float32),
            jnp.asarray(w3).astype(dtype),
            jnp.asarray(b3).reshape(-1, 1).astype(jnp.float32))


def nn2_forward(x, w1, b1c, w2, b2c, w3, b3c, *,
                min_variance=1e-5, block_rows=8192):
    """x: [B, n_inputs]. Params already prepared via prepare_nn2_params.

    Returns (mean [B], variance [B]), both float32.
    """
    B, n_inputs = x.shape
    n_hidden = w1.shape[0]

    # Batch tile: multiple of 128 (lane-dense (2, tb) output block + bf16 row
    # packing), default 8192 rows to amortize per-grid-step overhead, capped so
    # batches big enough to split yield >= 2 tiles (v7x megacore sharding).
    tb = block_rows
    if B > 128:
        tb = min(tb, _round_up(pl.cdiv(B, 2), 128))
    tb = min(tb, _round_up(B, 128))
    tb = max(128, _round_up(tb, 128))

    num_tiles = pl.cdiv(B, tb)
    b_pad = num_tiles * tb
    if b_pad != B:
        x = jnp.pad(x, ((0, b_pad - B), (0, 0)))

    kernel = functools.partial(_nn2_kernel, min_variance=min_variance)

    x_bytes = jnp.dtype(x.dtype).itemsize
    w_bytes = jnp.dtype(w1.dtype).itemsize
    n_w = n_inputs * n_hidden + n_hidden * n_hidden + n_hidden * 2
    cost = pl.CostEstimate(
        flops=2 * b_pad * n_w,
        transcendentals=2 * b_pad,              # sigmoid on [2, B]
        bytes_accessed=b_pad * n_inputs * x_bytes + n_w * w_bytes + b_pad * 2 * 4,
    )

    out = pl.pallas_call(
        kernel,
        out_shape=jax.ShapeDtypeStruct((2, b_pad), jnp.float32),
        grid_spec=pltpu.PrefetchScalarGridSpec(
            num_scalar_prefetch=0,
            grid=(num_tiles,),
            in_specs=[
                # x tile moves with the grid (double-buffered / pipelined).
                pl.BlockSpec((tb, n_inputs), lambda i: (i, 0)),
                # Weights & biases: constant index_map -> stay VMEM-resident.
                pl.BlockSpec((n_hidden, n_inputs), lambda i: (0, 0)),
                pl.BlockSpec((n_hidden, 1), lambda i: (0, 0)),
                pl.BlockSpec((n_hidden, n_hidden), lambda i: (0, 0)),
                pl.BlockSpec((n_hidden, 1), lambda i: (0, 0)),
                pl.BlockSpec((2, n_hidden), lambda i: (0, 0)),
                pl.BlockSpec((2, 1), lambda i: (0, 0)),
            ],
            out_specs=pl.BlockSpec((2, tb), lambda i: (0, i)),
        ),
        compiler_params=pltpu.CompilerParams(
            # Batch tiles are independent -> shard across both TCs on v7x.
            dimension_semantics=("parallel",),
        ),
        cost_estimate=cost,
    )(x, w1, b1c, w2, b2c, w3, b3c)

    # Contiguous row slices (no strided column gathers).
    return out[0, :B], out[1, :B]


def init_nn2_params(key, n_inputs, n_hidden):
    """Deterministic PyTorch-style Linear init: U(-1/sqrt(fan_in), 1/sqrt(fan_in))."""
    ks = jax.random.split(key, 6)

    def lin(kw, kb, fan_in, fan_out):
        bound = 1.0 / jnp.sqrt(fan_in)
        w = jax.random.uniform(kw, (fan_out, fan_in), jnp.float32, -bound, bound)
        b = jax.random.uniform(kb, (fan_out,), jnp.float32, -bound, bound)
        return w, b

    w1, b1 = lin(ks[0], ks[1], n_inputs, n_hidden)
    w2, b2 = lin(ks[2], ks[3], n_hidden, n_hidden)
    w3, b3 = lin(ks[4], ks[5], n_hidden, 2)
    return w1, b1, w2, b2, w3, b3


if __name__ == "__main__":
    B, n_inputs, n_hidden = 8, 16, 32
    key = jax.random.PRNGKey(0)
    kx, kp = jax.random.split(key)

    x = jax.random.normal(kx, (B, n_inputs), jnp.float32)
    w1, b1, w2, b2, w3, b3 = init_nn2_params(kp, n_inputs, n_hidden)

    # One-time parameter preprocessing (dtype cast + bias reshape only).
    params_f32 = prepare_nn2_params(w1, b1, w2, b2, w3, b3, dtype=jnp.float32)

    fwd = jax.jit(nn2_forward, static_argnames=("min_variance", "block_rows"))

    # ---- small-batch f32 check (single 128-row padded tile) ----
    mean, variance = fwd(x, *params_f32, min_variance=1e-5)
    jax.block_until_ready((mean, variance))

    h1 = jnp.maximum(x @ w1.T + b1, 0.0)
    h2 = jnp.maximum(h1 @ w2.T + b2, 0.0)
    ref_out = h2 @ w3.T + b3
    ref_mean = jax.nn.sigmoid(ref_out[:, 0])
    ref_var = jax.nn.sigmoid(ref_out[:, 1]) * 0.1 + 1e-5
    assert mean.shape == (B,) and variance.shape == (B,)
    assert jnp.allclose(mean, ref_mean, atol=1e-5), "mean mismatch (f32)"
    assert jnp.allclose(variance, ref_var, atol=1e-5), "variance mismatch (f32)"

    # ---- multi-tile + padded path (2 grid steps, B not a tile multiple) ----
    B2 = 300
    x2 = jax.random.normal(jax.random.PRNGKey(1), (B2, n_inputs), jnp.float32)
    mean2, var2 = fwd(x2, *params_f32, min_variance=1e-5)
    jax.block_until_ready((mean2, var2))

    h1 = jnp.maximum(x2 @ w1.T + b1, 0.0)
    h2 = jnp.maximum(h1 @ w2.T + b2, 0.0)
    ref_out2 = h2 @ w3.T + b3
    ref_mean2 = jax.nn.sigmoid(ref_out2[:, 0])
    ref_var2 = jax.nn.sigmoid(ref_out2[:, 1]) * 0.1 + 1e-5
    assert jnp.allclose(mean2, ref_mean2, atol=1e-5), "mean mismatch (tiled f32)"
    assert jnp.allclose(var2, ref_var2, atol=1e-5), "variance mismatch (tiled f32)"

    # ---- bf16-weight path (x stays f32 per perf review; f32 accumulation) ----
    params_bf16 = prepare_nn2_params(w1, b1, w2, b2, w3, b3, dtype=jnp.bfloat16)
    mean3, var3 = fwd(x2, *params_bf16, min_variance=1e-5)
    jax.block_until_ready((mean3, var3))
    assert jnp.allclose(mean3, ref_mean2, atol=5e-2), "mean mismatch (bf16 weights)"
    assert jnp.allclose(var3, ref_var2, atol=5e-3), "variance mismatch (bf16 weights)"

    print("KERNEL_OK")
</pallas_src>

<mosaic_0001>
module attributes {stable_mosaic.version = 11 : i64} {
  func.func @_nn2_kernel(%arg0: i32, %arg1: memref<128x16xf32, #tpu.memory_space<vmem>>, %arg2: memref<32x16xf32, #tpu.memory_space<vmem>>, %arg3: memref<32x1xf32, #tpu.memory_space<vmem>>, %arg4: memref<32x32xf32, #tpu.memory_space<vmem>>, %arg5: memref<32x1xf32, #tpu.memory_space<vmem>>, %arg6: memref<2x32xf32, #tpu.memory_space<vmem>>, %arg7: memref<2x1xf32, #tpu.memory_space<vmem>>, %arg8: memref<2x128xf32, #tpu.memory_space<vmem>>) attributes {dimension_semantics = [#tpu.dimension_semantics<parallel>], iteration_bounds = array<i64: 1>, scalar_prefetch = 0 : i64, scratch_operands = 0 : i64, tpu.core_type = #tpu.core_type<tc>, window_params = [{transform_indices = @transform_0, window_bounds = array<i64: 128, 16>}, {pipeline_mode = #tpu.pipeline_mode<synchronous>, transform_indices = @transform_1, window_bounds = array<i64: 32, 16>}, {pipeline_mode = #tpu.pipeline_mode<synchronous>, transform_indices = @transform_2, window_bounds = array<i64: 32, 1>}, {pipeline_mode = #tpu.pipeline_mode<synchronous>, transform_indices = @transform_3, window_bounds = array<i64: 32, 32>}, {pipeline_mode = #tpu.pipeline_mode<synchronous>, transform_indices = @transform_4, window_bounds = array<i64: 32, 1>}, {pipeline_mode = #tpu.pipeline_mode<synchronous>, transform_indices = @transform_5, window_bounds = array<i64: 2, 32>}, {pipeline_mode = #tpu.pipeline_mode<synchronous>, transform_indices = @transform_6, window_bounds = array<i64: 2, 1>}, {transform_indices = @transform_7, window_bounds = array<i64: 2, 128>}]} {
    %c0 = arith.constant 0 : index
    %c0_0 = arith.constant 0 : index
    %0 = vector.load %arg1[%c0, %c0_0] : memref<128x16xf32, #tpu.memory_space<vmem>>, vector<128x16xf32>
    %c0_1 = arith.constant 0 : index
    %c0_2 = arith.constant 0 : index
    %1 = vector.load %arg2[%c0_1, %c0_2] : memref<32x16xf32, #tpu.memory_space<vmem>>, vector<32x16xf32>
    %cst = arith.constant dense<0.000000e+00> : vector<32x128xf32>
    %2 = tpu.matmul %1, %0, %cst {dimension_numbers = #tpu.dot_dimension_numbers<[1], [1], [0], [0], [0, 0, 1, 0], [], []>} : vector<32x16xf32>, vector<128x16xf32>, vector<32x128xf32> -> vector<32x128xf32>
    %c0_3 = arith.constant 0 : index
    %c0_4 = arith.constant 0 : index
    %3 = vector.load %arg3[%c0_3, %c0_4] : memref<32x1xf32, #tpu.memory_space<vmem>>, vector<32x1xf32>
    %4 = vector.broadcast %3 : vector<32x1xf32> to vector<32x128xf32>
    %5 = arith.addf %2, %4 : vector<32x128xf32>
    %cst_5 = arith.constant 0.000000e+00 : f32
    %6 = vector.broadcast %cst_5 : f32 to vector<32x128xf32>
    %7 = arith.maximumf %5, %6 : vector<32x128xf32>
    %c0_6 = arith.constant 0 : index
    %c0_7 = arith.constant 0 : index
    %8 = vector.load %arg4[%c0_6, %c0_7] : memref<32x32xf32, #tpu.memory_space<vmem>>, vector<32x32xf32>
    %cst_8 = arith.constant dense<0.000000e+00> : vector<32x128xf32>
    %9 = tpu.matmul %8, %7, %cst_8 {dimension_numbers = #tpu.dot_dimension_numbers<[1], [0], [0], [1], [0, 0, 1, 1], [], []>} : vector<32x32xf32>, vector<32x128xf32>, vector<32x128xf32> -> vector<32x128xf32>
    %c0_9 = arith.constant 0 : index
    %c0_10 = arith.constant 0 : index
    %10 = vector.load %arg5[%c0_9, %c0_10] : memref<32x1xf32, #tpu.memory_space<vmem>>, vector<32x1xf32>
    %11 = vector.broadcast %10 : vector<32x1xf32> to vector<32x128xf32>
    %12 = arith.addf %9, %11 : vector<32x128xf32>
    %cst_11 = arith.constant 0.000000e+00 : f32
    %13 = vector.broadcast %cst_11 : f32 to vector<32x128xf32>
    %14 = arith.maximumf %12, %13 : vector<32x128xf32>
    %c0_12 = arith.constant 0 : index
    %c0_13 = arith.constant 0 : index
    %15 = vector.load %arg6[%c0_12, %c0_13] : memref<2x32xf32, #tpu.memory_space<vmem>>, vector<2x32xf32>
    %cst_14 = arith.constant dense<0.000000e+00> : vector<2x128xf32>
    %16 = tpu.matmul %15, %14, %cst_14 {dimension_numbers = #tpu.dot_dimension_numbers<[1], [0], [0], [1], [0, 0, 1, 1], [], []>} : vector<2x32xf32>, vector<32x128xf32>, vector<2x128xf32> -> vector<2x128xf32>
    %c0_15 = arith.constant 0 : index
    %c0_16 = arith.constant 0 : index
    %17 = vector.load %arg7[%c0_15, %c0_16] : memref<2x1xf32, #tpu.memory_space<vmem>>, vector<2x1xf32>
    %18 = vector.broadcast %17 : vector<2x1xf32> to vector<2x128xf32>
    %19 = arith.addf %16, %18 : vector<2x128xf32>
    %20 = arith.negf %19 : vector<2x128xf32>
    %21 = math.exp %20 : vector<2x128xf32>
    %cst_17 = arith.constant 1.000000e+00 : f32
    %22 = vector.broadcast %cst_17 : f32 to vector<2x128xf32>
    %23 = arith.addf %22, %21 : vector<2x128xf32>
    %24 = arith.divf %22, %23 : vector<2x128xf32>
    %25 = tpu.iota {dimensions = array<i32: 0>} : vector<2x128xi32>
    %c1_i32 = arith.constant 1 : i32
    %26 = vector.broadcast %c1_i32 : i32 to vector<2x128xi32>
    %27 = arith.cmpi eq, %25, %26 : vector<2x128xi32>
    %cst_18 = arith.constant 1.000000e-01 : f32
    %28 = vector.broadcast %cst_18 : f32 to vector<2x128xf32>
    %29 = arith.mulf %24, %28 : vector<2x128xf32>
    %cst_19 = arith.constant 9.99999974E-6 : f32
    %30 = vector.broadcast %cst_19 : f32 to vector<2x128xf32>
    %31 = arith.addf %29, %30 : vector<2x128xf32>
    %32 = arith.select %27, %31, %24 : vector<2x128xi1>, vector<2x128xf32>
    %c0_20 = arith.constant 0 : index
    %c0_21 = arith.constant 0 : index
    %33 = vector.load %arg8[%c0_20, %c0_21] : memref<2x128xf32, #tpu.memory_space<vmem>>, vector<2x128xf32>
    tpu.vector_store %arg8[%c0_20, %c0_21], %32 {strides = array<i32>} : memref<2x128xf32, #tpu.memory_space<vmem>>, vector<2x128xf32>,
    return
  }
  func.func @transform_0(%arg0: i32) -> (i32, i32) {
    %c0_i32 = arith.constant 0 : i32
    %c0_i32_0 = arith.constant 0 : i32
    return %arg0, %c0_i32 : i32, i32
  }
  func.func @transform_1(%arg0: i32) -> (i32, i32) {
    %c0_i32 = arith.constant 0 : i32
    %c0_i32_0 = arith.constant 0 : i32
    %c0_i32_1 = arith.constant 0 : i32
    return %c0_i32, %c0_i32_0 : i32, i32
  }
  func.func @transform_2(%arg0: i32) -> (i32, i32) {
    %c0_i32 = arith.constant 0 : i32
    %c0_i32_0 = arith.constant 0 : i32
    %c0_i32_1 = arith.constant 0 : i32
    return %c0_i32, %c0_i32_0 : i32, i32
  }
  func.func @transform_3(%arg0: i32) -> (i32, i32) {
    %c0_i32 = arith.constant 0 : i32
    %c0_i32_0 = arith.constant 0 : i32
    %c0_i32_1 = arith.constant 0 : i32
    return %c0_i32, %c0_i32_0 : i32, i32
  }
  func.func @transform_4(%arg0: i32) -> (i32, i32) {
    %c0_i32 = arith.constant 0 : i32
    %c0_i32_0 = arith.constant 0 : i32
    %c0_i32_1 = arith.constant 0 : i32
    return %c0_i32, %c0_i32_0 : i32, i32
  }
  func.func @transform_5(%arg0: i32) -> (i32, i32) {
    %c0_i32 = arith.constant 0 : i32
    %c0_i32_0 = arith.constant 0 : i32
    %c0_i32_1 = arith.constant 0 : i32
    return %c0_i32, %c0_i32_0 : i32, i32
  }
  func.func @transform_6(%arg0: i32) -> (i32, i32) {
    %c0_i32 = arith.constant 0 : i32
    %c0_i32_0 = arith.constant 0 : i32
    %c0_i32_1 = arith.constant 0 : i32
    return %c0_i32, %c0_i32_0 : i32, i32
  }
  func.func @transform_7(%arg0: i32) -> (i32, i32) {
    %c0_i32 = arith.constant 0 : i32
    %c0_i32_0 = arith.constant 0 : i32
    return %c0_i32, %arg0 : i32, i32
  }
}

</mosaic_0001>

<bundles_post_ra>
// kernel: nn2_forward.1
= control target key start
LH: loop header
LB: loop body
LE: loop exit
PB: predicated region body
PF: predicated region fallthrough
CT: control target
= control target key end

     0   :  { %vm70_vm0 = vcmask 130048   ;;  %v578_v2 = vmov 0   ;;  %vm248_vm1 = vcmask 261120   ;;  %v579_v50 = vmov 0.0   ;;  %s767_s0 = inlined_call_operand.vmem [shape: f32[128,16], index: 0, kind: input, shape index: {}]   ;;  %s768_s1 = inlined_call_operand.vmem [shape: f32[32,16], index: 1, kind: input, shape index: {}]   ;;  %s769_s2 = inlined_call_operand.vmem [shape: f32[32,1], index: 2, kind: input, shape index: {}]   ;;  %s770_s4 = inlined_call_operand.vmem [shape: f32[32,1], index: 4, kind: input, shape index: {}]   ;;  %s771_s6 = inlined_call_operand.vmem [shape: f32[2,1], index: 6, kind: input, shape index: {}]   ;;  %s772_s3 = inlined_call_operand.vmem [shape: f32[32,32], index: 3, kind: input, shape index: {}]   ;;  %s773_s5 = inlined_call_operand.vmem [shape: f32[2,32], index: 5, kind: input, shape index: {}]   ;;  %s774_s7 = inlined_call_operand.vmem [shape: f32[2,128], index: 7, kind: output, shape index: {}]  }
   0x1   :  { %v41_v0 = vld [vmem:[%s767_s0 + $0x78] sm:$0xff]  ;;  %v40_v1 = vld [vmem:[%s767_s0 + $0x70] sm:$0xff]  ;;  %572 = vset.pattern.permute.xlu0 %v578_v2  ;;  %573 = vset.pattern.permute.xlu1 %v578_v2  ;;  %v39_v3 = vld [vmem:[%s767_s0 + $0x68] sm:$0xff]  ;;  %vm580_vm2 = vmmov 0  }
   0x2   :  { %506 = vmatprep.subr.msk.mxu0 %vm70_vm0, %v41_v0  ;;  %v42_v4 = vld [vmem:[%s768_s1] sm:$0xff]  ;;  %v49_v5 = vld [vmem:[%s769_s2 + $0x18] sm:$0xff]  ;;  %v47_v6 = vld [vmem:[%s769_s2 + $0x8] sm:$0xff] }
   0x3   :  { %507 = vmatpush3.xpose.msk.msra.mxu0 %vm70_vm0, %v41_v0  ;;  %538 = vmatprep.mubr.msk.f32.mxu0 %vm70_vm0, %v42_v4  ;;  %v38_v7 = vld [vmem:[%s767_s0 + $0x60] sm:$0xff]  ;;  %v48_v8 = vld [vmem:[%s769_s2 + $0x10] sm:$0xff]  ;;  %v37_v10 = vld [vmem:[%s767_s0 + $0x58] sm:$0xff] }
   0x4   :  { %508 = vmatprep.subr.msk.mxu0 %vm70_vm0, %v40_v1  ;;  %67 = vperm.xlu0 %572, %v49_v5   ;;  %v46_v9 = vld [vmem:[%s769_s2] sm:$0xff]  ;;  %v227_v11 = vld [vmem:[%s770_s4 + $0x18] sm:$0xff]  ;;  %v226_v12 = vld [vmem:[%s770_s4 + $0x10] sm:$0xff] }
   0x5   :  { %57 = vperm.xlu1 %573, %v47_v6   ;;  %v36_v13 = vld [vmem:[%s767_s0 + $0x50] sm:$0xff]  ;;  %v225_v14 = vld [vmem:[%s770_s4 + $0x8] sm:$0xff]  ;;  %v224_v15 = vld [vmem:[%s770_s4] sm:$0xff] }
   0x6   :  { %v35_v16 = vld [vmem:[%s767_s0 + $0x48] sm:$0xff]  ;;  %v351_v17 = vld [vmem:[%s771_s6] sm:$0x3]  ;;  %v33_v19 = vld [vmem:[%s767_s0 + $0x38] sm:$0xff] }
   0x7   :  { %509 = vmatpush3.xpose.msk.msra.mxu0 %vm70_vm0, %v40_v1  ;;  %v34_v18 = vld [vmem:[%s767_s0 + $0x40] sm:$0xff]  ;;  %v32_v20 = vld [vmem:[%s767_s0 + $0x30] sm:$0xff]  ;;  %v31_v21 = vld [vmem:[%s767_s0 + $0x28] sm:$0xff] }
   0x8   :  { %510 = vmatprep.subr.msk.mxu0 %vm70_vm0, %v39_v3  ;;  %62 = vperm.xlu0 %572, %v48_v8   ;;  %v30_v22 = vld [vmem:[%s767_s0 + $0x20] sm:$0xff]  ;;  %v29_v23 = vld [vmem:[%s767_s0 + $0x18] sm:$0xff]  ;;  %v28_v24 = vld [vmem:[%s767_s0 + $0x10] sm:$0xff] }
   0x9   :  { %52 = vperm.xlu1 %573, %v46_v9   ;;  %v27_v25 = vld [vmem:[%s767_s0 + $0x8] sm:$0xff]  ;;  %v26_v26 = vld [vmem:[%s767_s0] sm:$0xff]  ;;  %v44_v28 = vld [vmem:[%s768_s1 + $0x10] sm:$0xff] }
   0xa   :  { %v43_v27 = vld [vmem:[%s768_s1 + $0x8] sm:$0xff]  ;;  %v45_v29 = vld [vmem:[%s768_s1 + $0x18] sm:$0xff]  ;;  %v220_v30 = vld [vmem:[%s772_s3] sm:$0xff] }
   0xb   :  { %511 = vmatpush3.xpose.msk.msra.mxu0 %vm70_vm0, %v39_v3  ;;  %552 = vmatprep.mubr.msk.f32.mxu1 %vm248_vm1, %v220_v30  ;;  %v221_v47 = vld [vmem:[%s772_s3 + $0x8] sm:$0xff]  ;;  %v222_v48 = vld [vmem:[%s772_s3 + $0x10] sm:$0xff]  ;;  %v223_v49 = vld [vmem:[%s772_s3 + $0x18] sm:$0xff] }
   0xc   :  { %512 = vmatprep.subr.msk.mxu0 %vm70_vm0, %v38_v7  ;;  %245 = vperm.xlu0 %572, %v227_v11   ;;  %v350_v3 = vld [vmem:[%s773_s5] sm:$0x3]  ;;  %v436_v11 = vlaneseq }
   0xd   :  { %240 = vperm.xlu1 %573, %v226_v12  }
   0xe   :  { %v437_v12 = vshrl.u32 %v436_v11, 7 }
   0xf   :  { %513 = vmatpush3.xpose.msk.msra.mxu0 %vm70_vm0, %v38_v7 }
  0x10   :  { %514 = vmatprep.subr.msk.mxu0 %vm70_vm0, %v37_v10  ;;  %235 = vperm.xlu0 %572, %v225_v14   ;;  %vm438_vm3 = vcmp.eq.s32.totalorder %v437_v12, 1 }
  0x11   :  { %230 = vperm.xlu1 %573, %v224_v15  }
  0x13   :  { %515 = vmatpush3.xpose.msk.msra.mxu0 %vm70_vm0, %v37_v10 }
  0x14   :  { %516 = vmatprep.subr.msk.mxu0 %vm70_vm0, %v36_v13  ;;  %354 = vperm.xlu0 %572, %v351_v17  }
  0x17   :  { %517 = vmatpush3.xpose.msk.msra.mxu0 %vm70_vm0, %v36_v13 }
  0x18   :  { %518 = vmatprep.subr.msk.mxu0 %vm70_vm0, %v35_v16 }
  0x1b   :  { %519 = vmatpush3.xpose.msk.msra.mxu0 %vm70_vm0, %v35_v16 }
  0x1c   :  { %520 = vmatprep.subr.msk.mxu0 %vm70_vm0, %v34_v18 }
  0x1f   :  { %521 = vmatpush3.xpose.msk.msra.mxu0 %vm70_vm0, %v34_v18 }
  0x20   :  { %522 = vmatprep.subr.msk.mxu0 %vm70_vm0, %v33_v19 }
  0x23   :  { %523 = vmatpush3.xpose.msk.msra.mxu0 %vm70_vm0, %v33_v19 }
  0x24   :  { %524 = vmatprep.subr.msk.mxu0 %vm70_vm0, %v32_v20 }
  0x27   :  { %525 = vmatpush3.xpose.msk.msra.mxu0 %vm70_vm0, %v32_v20 }
  0x28   :  { %526 = vmatprep.subr.msk.mxu0 %vm70_vm0, %v31_v21 }
  0x2b   :  { %527 = vmatpush3.xpose.msk.msra.mxu0 %vm70_vm0, %v31_v21 }
  0x2c   :  { %528 = vmatprep.subr.msk.mxu0 %vm70_vm0, %v30_v22 }
  0x2f   :  { %529 = vmatpush3.xpose.msk.msra.mxu0 %vm70_vm0, %v30_v22 }
  0x30   :  { %530 = vmatprep.subr.msk.mxu0 %vm70_vm0, %v29_v23 }
  0x33   :  { %531 = vmatpush3.xpose.msk.msra.mxu0 %vm70_vm0, %v29_v23 }
  0x34   :  { %532 = vmatprep.subr.msk.mxu0 %vm70_vm0, %v28_v24 }
  0x37   :  { %533 = vmatpush3.xpose.msk.msra.mxu0 %vm70_vm0, %v28_v24 }
  0x38   :  { %534 = vmatprep.subr.msk.mxu0 %vm70_vm0, %v27_v25 }
  0x3b   :  { %535 = vmatpush3.xpose.msk.msra.mxu0 %vm70_vm0, %v27_v25 }
  0x3c   :  { %536 = vmatprep.subr.msk.mxu0 %vm70_vm0, %v26_v26 }
  0x3f   :  { %537 = vmatpush3.xpose.msk.msra.mxu0 %vm70_vm0, %v26_v26 }
  0x42   :  { %539 = vmatmul.mubr.msk.f32.vlgmr.msra.gmra.mxu0 %vm70_vm0, %v43_v27 }
  0x43   :  { %541 = vmatprep.mubr.msk.f32.mxu0 %vm70_vm0, %v44_v28 }
  0x46   :  { %542 = vmatmul.mubr.msk.f32.gmra.mxu0 %vm70_vm0, %v45_v29 }
  0x7f   :  { %v68_v31 = vpop.permute.xlu0 %67 }
  0x80   :  { %v58_v33 = vpop.permute.xlu1 %57 }
  0x83   :  { %v63_v37 = vpop.permute.xlu0 %62 }
  0x84   :  { %v53_v42 = vpop.permute.xlu1 %52 }
  0x87   :  { %v246_v51 = vpop.permute.xlu0 %245 }
  0x88   :  { %v241_v53 = vpop.permute.xlu1 %240 }
  0x8b   :  { %v236_v57 = vpop.permute.xlu0 %235 }
  0x8c   :  { %v231_v62 = vpop.permute.xlu1 %230 }
  0x8f   :  { %v355_v4 = vpop.permute.xlu0 %354 }
 0x102   :  { %v540_v32 = vpop.f32.mrf.mxu0 }
 0x103   :  { %v203_v39 = vadd.f32 %v540_v32, %v58_v33 }
 0x104   :  { %v197_v34 = vpop.f32.mrf.mxu0 }
 0x105   :  { %v198_v43 = vadd.f32 %v197_v34, %v53_v42  ;;  %v217_v45 = vmax.f32 %v203_v39, 0.0 }
 0x106   :  { %v543_v35 = vpop.f32.mrf.mxu0 }
 0x107   :  { %v213_v36 = vadd.f32 %v543_v35, %v68_v31  ;;  %v216_v46 = vmax.f32 %v198_v43, 0.0 }
 0x108   :  { %v207_v38 = vpop.f32.mrf.mxu0 }
 0x109   :  { %v219_v40 = vmax.f32 %v213_v36, 0.0  ;;  %v208_v41 = vadd.f32 %v207_v38, %v63_v37 }
 0x10b   :  { %v218_v44 = vmax.f32 %v208_v41, 0.0  ;;  %544 = vmatprep.subr.mxu1 %v219_v40 }
 0x10c   :  { %545 = vmatpush3.msra.mxu1 %v219_v40 }
 0x10d   :  { %546 = vmatprep.subr.mxu1 %v218_v44 }
 0x10e   :  { %547 = vmatpush3.msra.mxu1 %v218_v44 }
 0x10f   :  { %548 = vmatprep.subr.mxu1 %v217_v45 }
 0x110   :  { %549 = vmatpush3.msra.mxu1 %v217_v45 }
 0x111   :  { %550 = vmatprep.subr.mxu1 %v216_v46 }
 0x112   :  { %551 = vmatpush3.msra.mxu1 %v216_v46 }
 0x113   :  { %553 = vmatmul.mubr.msk.f32.vlgmr.msra.gmra.mxu1 %vm248_vm1, %v221_v47  ;;  %558 = vmatprep.subr.mxu1 %v579_v50 }
 0x114   :  { %555 = vmatprep.mubr.msk.f32.mxu1 %vm248_vm1, %v222_v48 }
 0x117   :  { %556 = vmatmul.mubr.msk.f32.gmra.mxu1 %vm248_vm1, %v223_v49 }
 0x118   :  { %566 = vmatprep.mubr.msk.f32.mxu1 %vm580_vm2, %v579_v50 }
 0x1d3   :  { %v554_v52 = vpop.f32.mrf.mxu1 }
 0x1d4   :  { %v333_v59 = vadd.f32 %v554_v52, %v236_v57 }
 0x1d5   :  { %v327_v54 = vpop.f32.mrf.mxu1 }
 0x1d6   :  { %v328_v63 = vadd.f32 %v327_v54, %v231_v62  ;;  %v347_v1 = vmax.f32 %v333_v59, 0.0 }
 0x1d7   :  { %v557_v55 = vpop.f32.mrf.mxu1 }
 0x1d8   :  { %v343_v56 = vadd.f32 %v557_v55, %v246_v51  ;;  %v346_v2 = vmax.f32 %v328_v63, 0.0 }
 0x1d9   :  { %v337_v58 = vpop.f32.mrf.mxu1 }
 0x1da   :  { %v349_v60 = vmax.f32 %v343_v56, 0.0  ;;  %v338_v61 = vadd.f32 %v337_v58, %v241_v53 }
 0x1dc   :  { %v348_v0 = vmax.f32 %v338_v61, 0.0  ;;  %559 = vmatpush3.msra.mxu1 %v349_v60 }
 0x1dd   :  { %560 = vmatprep.subr.mxu1 %v579_v50 }
 0x1de   :  { %561 = vmatpush3.msra.mxu1 %v348_v0 }
 0x1df   :  { %562 = vmatprep.subr.mxu1 %v579_v50 }
 0x1e0   :  { %563 = vmatpush3.msra.mxu1 %v347_v1 }
 0x1e1   :  { %564 = vmatprep.subr.mxu1 %v579_v50 }
 0x1e2   :  { %565 = vmatpush3.msra.mxu1 %v346_v2 }
 0x1e3   :  { %567 = vmatmul.mubr.msk.f32.vlgmr.msra.gmra.mxu1 %vm248_vm1, %v350_v3 }
 0x2a3   :  { %v426_v5 = vpop.f32.mrf.mxu1 }
 0x2a4   :  { %v427_v6 = vadd.f32 %v426_v5, %v355_v4 }
 0x2a5   :  { %v568_v7 = vpop.f32.mrf.mxu1 }
 0x2a6   :  { %v472_v8 = vmul.f32 -1.442695, %v427_v6 }
 0x2a8   :  { %574 = vpow2.f32 %v472_v8 }
 0x2b5   :  { %v575_v9 = vpop.eup %574 }
 0x2b6   :  { %v433_v10 = vadd.f32 1.0, %v575_v9 }
 0x2b8   :  { %576 = vrcp.f32 %v433_v10 }
 0x2c5   :  { %v577_v13 = vpop.eup %576 }
 0x2c6   :  { %v439_v14 = vmul.f32 0.1, %v577_v13 }
 0x2c8   :  { %v440_v15 = vadd.f32 1e-05, %v439_v14 }
 0x2ca   :  { %v441_v16 = vsel %vm438_vm3, %v440_v15, %v577_v13 }
 0x2cb   :  { %442 = vst [vmem:[%s774_s7] sm:$0x3] %v441_v16 }

</bundles_post_ra>
